<compile_context>
chip_gen: v7x
topology: tpu7x:2x2x1
jax: 0.10.0
libtpu: 0.0.40
codegen_flags: <defaults>
</compile_context>

<pallas_src>
import jax
import jax.numpy as jnp
from jax.experimental import pallas as pl
from jax.experimental.pallas import tpu as pltpu


# ---------------- Pallas kernel (backward only) ----------------

# Tile geometry: lane-dense last dim, ~1 MiB f32 tiles -> pipelines well and
# stays far under scoped VMEM on all of v5e / v6e / v7x.
_LANE = 1024   # multiple of 128 (full-width vector stores)
_TM = 256      # rows per tile (multiple of 8 sublanes)


def _neg_scale_kernel(neg_alpha_ref, g_ref, o_ref):
    # grad_input = grad_output * (-alpha); negation pre-folded into the scalar.
    o_ref[...] = (g_ref[...] * neg_alpha_ref[0]).astype(o_ref.dtype)


def _neg_scale_pallas(g, alpha):
    """Compute -alpha * g with a tiled, lane-dense Pallas kernel."""
    orig_shape = g.shape
    orig_dtype = g.dtype
    n = g.size

    # Lane-dense 2D layout: (rows, _LANE), rows a multiple of the tile height.
    rows = -(-n // _LANE)                    # cdiv
    rows = max(8, ((rows + 7) // 8) * 8)     # at least one (8,128)-aligned tile
    tm = min(_TM, rows)
    rows = ((rows + tm - 1) // tm) * tm      # no partial blocks
    padded = rows * _LANE

    flat = jnp.ravel(g)
    if padded > n:
        flat = jnp.pad(flat, (0, padded - n))
    g2d = flat.reshape(rows, _LANE)

    # Keep the scalar in float32 in SMEM (SMEM is 32-bit scalar storage);
    # fold the negation in here so the kernel does a single multiply.
    neg_alpha = jnp.reshape(-jnp.asarray(alpha, dtype=jnp.float32), (1,))

    out2d = pl.pallas_call(
        _neg_scale_kernel,
        out_shape=jax.ShapeDtypeStruct((rows, _LANE), orig_dtype),
        grid=(rows // tm,),
        in_specs=[
            pl.BlockSpec(memory_space=pltpu.MemorySpace.SMEM),   # neg_alpha
            pl.BlockSpec((tm, _LANE), lambda i: (i, 0)),          # grad tile
        ],
        out_specs=pl.BlockSpec((tm, _LANE), lambda i: (i, 0)),
        compiler_params=pltpu.CompilerParams(
            dimension_semantics=("parallel",)),
    )(neg_alpha, g2d)

    return out2d.reshape(-1)[:n].reshape(orig_shape)


# ---------------- custom_vjp wiring (RevGradFunction semantics) -------------

@jax.custom_vjp
def revgrad(x, alpha):
    # Forward is a pure identity: no kernel, no HBM traffic.
    return x


def _revgrad_fwd(x, alpha):
    return x, alpha


def _revgrad_bwd(alpha, g):
    grad_input = _neg_scale_pallas(g, alpha)
    # alpha never receives a gradient (matches PyTorch's `return (grad, None)`).
    return grad_input, jnp.zeros_like(alpha)


revgrad.defvjp(_revgrad_fwd, _revgrad_bwd)


# ---------------- Module-style wrapper ----------------

class RevGrad:
    """Gradient reversal layer. No parameters; forward is identity."""

    def __init__(self, alpha=1.0):
        self._alpha = jnp.asarray(alpha, dtype=jnp.float32)

    def __call__(self, input_):
        return revgrad(input_, self._alpha)


# ---------------- Demo / smoke test ----------------

if __name__ == "__main__":
    key = jax.random.PRNGKey(0)
    x = jax.random.normal(key, (2, 4, 16, 16), dtype=jnp.float32)  # NCHW

    layer = RevGrad(alpha=1.0)

    # Forward: must be exact identity.
    y = jax.block_until_ready(layer(x))
    assert y.shape == x.shape and y.dtype == x.dtype
    assert bool(jnp.all(y == x))

    # Backward: d/dx sum(revgrad(x)) should be -alpha everywhere.
    grad_fn = jax.grad(lambda xx: jnp.sum(layer(xx)))
    gx = jax.block_until_ready(grad_fn(x))
    assert bool(jnp.allclose(gx, -1.0 * jnp.ones_like(x)))

    # Backward with a non-trivial upstream cotangent: grad = -alpha * ct.
    _, vjp_fn = jax.vjp(lambda xx: layer(xx), x)
    ct = jax.random.normal(jax.random.PRNGKey(1), x.shape, dtype=jnp.float32)
    (gx2,) = vjp_fn(ct)
    gx2 = jax.block_until_ready(gx2)
    assert bool(jnp.allclose(gx2, -1.0 * ct, rtol=1e-6, atol=1e-6))

    # Backward with alpha != 1.
    layer2 = RevGrad(alpha=2.5)
    gx3 = jax.block_until_ready(
        jax.grad(lambda xx: jnp.sum(layer2(xx)))(x))
    assert bool(jnp.allclose(gx3, -2.5 * jnp.ones_like(x)))

    print("KERNEL_OK")
</pallas_src>

<mosaic_0001>
module attributes {stable_mosaic.version = 11 : i64} {
  func.func @_neg_scale_kernel(%arg0: i32, %arg1: memref<1xf32, #tpu.memory_space<smem>>, %arg2: memref<8x1024xf32, #tpu.memory_space<vmem>>, %arg3: memref<8x1024xf32, #tpu.memory_space<vmem>>) attributes {dimension_semantics = [#tpu.dimension_semantics<parallel>], iteration_bounds = array<i64: 1>, scalar_prefetch = 0 : i64, scratch_operands = 0 : i64, tpu.core_type = #tpu.core_type<tc>, window_params = [{transform_indices = @transform_0, window_bounds = array<i64: 1>}, {transform_indices = @transform_1, window_bounds = array<i64: 8, 1024>}, {transform_indices = @transform_2, window_bounds = array<i64: 8, 1024>}]} {
    %c0 = arith.constant 0 : index
    %c0_0 = arith.constant 0 : index
    %0 = vector.load %arg2[%c0, %c0_0] : memref<8x1024xf32, #tpu.memory_space<vmem>>, vector<8x1024xf32>
    %c0_1 = arith.constant 0 : index
    %1 = memref.load %arg1[%c0_1] : memref<1xf32, #tpu.memory_space<smem>>
    %2 = vector.broadcast %1 : f32 to vector<8x1024xf32>
    %3 = arith.mulf %0, %2 : vector<8x1024xf32>
    %c0_2 = arith.constant 0 : index
    %c0_3 = arith.constant 0 : index
    %4 = vector.load %arg3[%c0_2, %c0_3] : memref<8x1024xf32, #tpu.memory_space<vmem>>, vector<8x1024xf32>
    tpu.vector_store %arg3[%c0_2, %c0_3], %3 {strides = array<i32>} : memref<8x1024xf32, #tpu.memory_space<vmem>>, vector<8x1024xf32>,
    return
  }
  func.func @transform_0(%arg0: i32) -> i32 {
    %c0_i32 = arith.constant 0 : i32
    %c0_i32_0 = arith.constant 0 : i32
    return %c0_i32 : i32
  }
  func.func @transform_1(%arg0: i32) -> (i32, i32) {
    %c0_i32 = arith.constant 0 : i32
    %c0_i32_0 = arith.constant 0 : i32
    return %arg0, %c0_i32 : i32, i32
  }
  func.func @transform_2(%arg0: i32) -> (i32, i32) {
    %c0_i32 = arith.constant 0 : i32
    %c0_i32_0 = arith.constant 0 : i32
    return %arg0, %c0_i32 : i32, i32
  }
}

</mosaic_0001>

<bundles_post_ra>
// kernel: tpu_custom_call.1
= control target key start
LH: loop header
LB: loop body
LE: loop exit
PB: predicated region body
PF: predicated region fallthrough
CT: control target
= control target key end

     0   :  { %8 = vsyncpa [#allocation4], 0  ;;  %s160_s0 = inlined_call_operand.<no memory space> [shape: f32[1], index: 0, kind: input, shape index: {}]   ;;  %s161_s1 = inlined_call_operand.hbm [shape: f32[8,1024], index: 1, kind: input, shape index: {}]   ;;  %s162_s2 = inlined_call_operand.hbm [shape: f32[8,1024], index: 2, kind: output, shape index: {}]  }
   0x1   :  { %9 = vsyncpa [#allocation5], 0  ;;  %s116_s9 = smov [#allocation3]   ;;  %s68_s13 = scalar_lea.hbm %s161_s1, 1024 }
   0x2   :  { %s18_s10 = sshll.u32 %s116_s9, 4  ;;  %p69_p0 = scmp.ne.s32.totalorder %s161_s1, %s68_s13  ;;  %s19_s10 = int_to_ptr.vmem [resolvable:$true] %s18_s10 }
   0x3   :  { %p72_p1 = scmp.lt.u32.totalorder %s68_s13, %s161_s1 }
   0x5   :  { %p74_p2 = pnand %p72_p1, %p69_p0 }
   0x7   :  { %77 = shalt.err (!%p74_p2)
}
   0x8   :  { %s78_s18 = scalar_lea.vmem %s19_s10, 1024  ;;  %p83_p4 = scmp.lt.s32.totalorder %s19_s10, %s19_s10 }
   0x9   :  { %p79_p3 = scmp.ne.s32.totalorder %s19_s10, %s78_s18  ;;  %p84_p5 = scmp.lt.s32.totalorder %s78_s18, %s78_s18 }
   0xb   :  { %p85_p6 = por %p84_p5, %p83_p4 }
   0xd   :  { %p86_p7 = pnand %p85_p6, %p79_p3 }
   0xf   :  { %89 = shalt.err (!%p86_p7)
}
  0x10   :  { %21 = dma.hbm_to_vmem [thread:$0]  %s161_s1, 1024, %s19_s10, [#allocation4]  }
  0x11   :  { %112 = dma.done.wait [#allocation4], 1024  }
  0x12   :  { %113 = vsyncadd [#allocation4], 4294966272  ;;  %v34_v0 = vstv %s160_s0  ;;  %v25_v1 = vld [vmem:[#allocation3] sm:$0xff]  ;;  %v26_v2 = vld [vmem:[#allocation3 + $0x8] sm:$0xff]  ;;  %s117_s23 = smov [#allocation6]  }
  0x13   :  { %v27_v3 = vld [vmem:[#allocation3 + $0x10] sm:$0xff]  ;;  %s57_s24 = sshll.u32 %s117_s23, 4  ;;  %v35_v4 = vmul.f32 %v34_v0, %v25_v1  ;;  %v36_v5 = vmul.f32 %v34_v0, %v26_v2  ;;  %v28_v7 = vld [vmem:[#allocation3 + $0x18] sm:$0xff]  ;;  %v29_v8 = vld [vmem:[#allocation3 + $0x20] sm:$0xff]  ;;  %s58_s24 = int_to_ptr.vmem [resolvable:$true] %s57_s24 }
  0x14   :  { %v37_v6 = vmul.f32 %v34_v0, %v27_v3  ;;  %v30_v9 = vld [vmem:[#allocation3 + $0x28] sm:$0xff]  ;;  %v38_v10 = vmul.f32 %v34_v0, %v28_v7  ;;  %v39_v11 = vmul.f32 %v34_v0, %v29_v8  ;;  %v31_v13 = vld [vmem:[#allocation3 + $0x30] sm:$0xff]  ;;  %v32_v14 = vld [vmem:[#allocation3 + $0x38] sm:$0xff]  ;;  %s90_s0 = scalar_lea.vmem %s58_s24, 1024  ;;  %p95_p9 = scmp.lt.s32.totalorder %s58_s24, %s58_s24 }
  0x15   :  { %v40_v12 = vmul.f32 %v34_v0, %v30_v9  ;;  %43 = vst [vmem:[#allocation6] sm:$0xff] %v35_v4  ;;  %44 = vst [vmem:[#allocation6 + $0x8] sm:$0xff] %v36_v5  ;;  %v41_v15 = vmul.f32 %v34_v0, %v31_v13  ;;  %v42_v16 = vmul.f32 %v34_v0, %v32_v14  ;;  %p91_p8 = scmp.ne.s32.totalorder %s58_s24, %s90_s0  ;;  %p96_p10 = scmp.lt.s32.totalorder %s90_s0, %s90_s0 }
  0x16   :  { %45 = vst [vmem:[#allocation6 + $0x10] sm:$0xff] %v37_v6  ;;  %46 = vst [vmem:[#allocation6 + $0x18] sm:$0xff] %v38_v10 }
  0x17   :  { %47 = vst [vmem:[#allocation6 + $0x20] sm:$0xff] %v39_v11  ;;  %48 = vst [vmem:[#allocation6 + $0x28] sm:$0xff] %v40_v12  ;;  %p97_p11 = por %p96_p10, %p95_p9 }
  0x18   :  { %49 = vst [vmem:[#allocation6 + $0x30] sm:$0xff] %v41_v15  ;;  %50 = vst [vmem:[#allocation6 + $0x38] sm:$0xff] %v42_v16 }
  0x19   :  { %p98_p12 = pnand %p97_p11, %p91_p8 }
  0x1b   :  { %101 = shalt.err (!%p98_p12)
}
  0x1c   :  { %s102_s26 = scalar_lea.hbm %s162_s2, 1024 }
  0x1d   :  { %p103_p13 = scmp.ne.s32.totalorder %s162_s2, %s102_s26  ;;  %p106_p0 = scmp.lt.u32.totalorder %s102_s26, %s162_s2 }
  0x1f   :  { %p108_p1 = pnand %p106_p0, %p103_p13 }
  0x21   :  { %111 = shalt.err (!%p108_p1)
}
  0x22   :  { %60 = dma.vmem_to_hbm [thread:$0]  %s58_s24, 1024, %s162_s2, [#allocation5]  }
  0x23   :  { %114 = dma.done.wait [#allocation5], 1024  }
  0x24   :  { %115 = vsyncadd [#allocation5], 4294966272 }
  0x25   :  { %64 = vsyncpa [#allocation4], 1 }
  0x26   :  { %65 = vsyncpa [#allocation5], 1 }

</bundles_post_ra>
